<compile_context>
chip_gen: v6e
topology: v6e:2x2x1
jax: 0.10.0
libtpu: 0.0.40
codegen_flags: <defaults>
</compile_context>

<pallas_src>
import functools

import jax
import jax.numpy as jnp
from jax.experimental import pallas as pl
from jax.experimental.pallas import tpu as pltpu

_LANE = 128
_SMALL_OBDIM = 8                         # VPU outer-product threshold for layer 0
_MAX_TILE_B = 32768                      # columns per grid step, upper cap
_VMEM_LIMIT_BYTES = 48 * 1024 * 1024     # scoped VMEM: safe on v7x (64 MiB/TC)
_VMEM_TARGET_BYTES = 40 * 1024 * 1024    # tile-sizing target (headroom for weights)


def _mlp_kernel(*refs, n_hidden: int):
    """One batch tile of the MLP forward; batch lives on the lane axis.

    refs = (obs_ref, w0, b0, ..., w_{h-1}, b_{h-1}, w_last, b_last, out_ref)
      obs_ref : (TILE_B, ob_dim)   natural row-major layout, native dtype
      hidden wi: (out_i, in_i) f32   bi: (out_i, 1) f32
      w_last  : (size, 1) f32        b_last: (1, 1) f32
      out_ref : (1, TILE_B) f32
    """
    obs_ref = refs[0]
    out_ref = refs[-1]
    p = refs[1:-1]
    ob_dim = obs_ref.shape[-1]

    # One-shot in-kernel transpose of the small obs tile: (TILE_B, ob_dim) ->
    # (ob_dim, TILE_B).  XLU work that hides under the obs DMA; keeps every
    # later op (bias add, tanh, final reduce, store) lane-dense over batch.
    x = obs_ref[...].astype(jnp.float32).T  # (ob_dim, TILE_B)

    for i in range(n_hidden):
        w = p[2 * i][...]        # (out, in) f32
        b = p[2 * i + 1][...]    # (out, 1)  f32, broadcasts over lanes
        if i == 0 and ob_dim <= _SMALL_OBDIM:
            # K=ob_dim is far too small for the MXU; unrolled VPU
            # outer-product accumulation (VALU slots are otherwise idle)
            # keeps layer 0 in full f32 precision.
            pre = b
            for k in range(ob_dim):
                pre = pre + w[:, k:k + 1] * x[k:k + 1, :]
        else:
            # bf16 MXU operands (native on v5e/v6e/v7x), f32 accumulation.
            pre = jnp.dot(w.astype(jnp.bfloat16), x.astype(jnp.bfloat16),
                          preferred_element_type=jnp.float32) + b
        x = jnp.tanh(pre)        # (out, TILE_B) f32

    w_last = p[2 * n_hidden][...]      # (size, 1)
    b_last = p[2 * n_hidden + 1][...]  # (1, 1)
    # Final Linear(size, 1) as VPU multiply + sublane (XLU) reduce: avoids a
    # 1-wide MXU matmul and keeps the result lane-dense.
    out = jnp.sum(w_last * x, axis=0, keepdims=True) + b_last  # (1, TILE_B)
    out_ref[...] = out.astype(out_ref.dtype)


def _pick_tile_b(batch, ob_dim, act_rows, obs_itemsize, param_bytes):
    """Columns per grid step, sized from the per-column VMEM footprint."""
    # Double-buffered obs tile + double-buffered output column + a few
    # f32/bf16 activation copies of height act_rows.
    per_col = 2 * ob_dim * obs_itemsize + 2 * 4 + 12 * max(act_rows, 8)
    budget = max(_VMEM_TARGET_BYTES - 2 * param_bytes, 1 << 20)
    tile = budget // per_col
    # Cap so the batch grid has >= 2 steps when the batch allows it: the
    # "parallel" axis then actually feeds both TensorCores on v7x.
    two_way = pl.cdiv(pl.cdiv(batch, 2), _LANE) * _LANE
    tile = min(tile, _MAX_TILE_B, max(two_way, _LANE))
    return int(max((tile // _LANE) * _LANE, _LANE))


def value_critic_forward(obs, params):
    """ValueCritic forward: torch-style network(obs).squeeze().

    Args:
      obs:    [B, ob_dim] observations (any float dtype; DMA'd as-is).
      params: list of (W, b) in PyTorch nn.Linear convention:
              W: (out_features, in_features), b: (out_features,).
              The last layer must have out_features == 1.
    """
    B, ob_dim = obs.shape
    n_hidden = len(params) - 1
    act_rows = params[0][0].shape[0] if n_hidden > 0 else ob_dim

    flat_inputs = []
    in_specs = []
    param_bytes = 0
    for layer, (w, b) in enumerate(params):
        if layer < n_hidden:
            w_in = w.astype(jnp.float32)                 # (out, in)
            b_in = b.reshape(-1, 1).astype(jnp.float32)  # (out, 1)
        else:
            w_in = w.reshape(-1, 1).astype(jnp.float32)  # (size, 1)
            b_in = b.reshape(1, 1).astype(jnp.float32)   # (1, 1)
        flat_inputs += [w_in, b_in]
        param_bytes += (w_in.size + b_in.size) * 4
        # Full-array blocks with a constant index map: weights are fetched
        # once and stay resident in VMEM across all grid steps.
        in_specs.append(pl.BlockSpec(w_in.shape, lambda i: (0, 0)))
        in_specs.append(pl.BlockSpec(b_in.shape, lambda i: (0, 0)))

    tile_b = _pick_tile_b(B, ob_dim, act_rows,
                          jnp.dtype(obs.dtype).itemsize, param_bytes)
    grid = (pl.cdiv(B, tile_b),)
    b_padded = grid[0] * tile_b  # output allocation only; obs is NOT padded

    # obs streamed in its natural (B, ob_dim) layout and native dtype: no
    # wrapper-side transpose / pad / upcast (no extra HBM pass).  If tile_b
    # does not divide B, Pallas handles the partial final block; its garbage
    # columns are column-local and are sliced off below.
    obs_spec = pl.BlockSpec((tile_b, ob_dim), lambda i: (i, 0))

    out = pl.pallas_call(
        functools.partial(_mlp_kernel, n_hidden=n_hidden),
        out_shape=jax.ShapeDtypeStruct((1, b_padded), jnp.float32),
        grid_spec=pltpu.PrefetchScalarGridSpec(
            num_scalar_prefetch=0,
            grid=grid,
            in_specs=[obs_spec] + in_specs,
            out_specs=pl.BlockSpec((1, tile_b), lambda i: (0, i)),
        ),
        compiler_params=pltpu.CompilerParams(
            # Batch tiles are independent -> both v7x TensorCores take half
            # the grid; neutral on single-TC v5e/v6e.
            dimension_semantics=("parallel",),
            # Safe on every generation incl. v7x's 64 MiB physical VMEM.
            vmem_limit_bytes=_VMEM_LIMIT_BYTES,
        ),
    )(obs, *flat_inputs)

    # torch .squeeze(): (B, 1) -> (B,), and (1, 1) -> scalar when B == 1.
    return jnp.squeeze(out[0, :B])


def init_value_critic_params(key, ob_dim: int, n_layers: int, layer_size: int):
    """nn.Linear-style init: uniform(+/- 1/sqrt(fan_in)); W: (out, in), b: (out,)."""
    params = []
    in_size = ob_dim
    for out_size in [layer_size] * n_layers + [1]:
        key, kw, kb = jax.random.split(key, 3)
        bound = 1.0 / (in_size ** 0.5)
        w = jax.random.uniform(kw, (out_size, in_size), jnp.float32, -bound, bound)
        b = jax.random.uniform(kb, (out_size,), jnp.float32, -bound, bound)
        params.append((w, b))
        in_size = out_size
    return params


def _reference_forward(obs, params):
    x = obs.astype(jnp.float32)
    for w, b in params[:-1]:
        x = jnp.tanh(x @ w.T + b)
    w_last, b_last = params[-1]  # (1, size), (1,)
    return jnp.sum(x * w_last[0], axis=-1) + b_last[0]


if __name__ == "__main__":
    # Small shapes consistent with ValueCritic(ob_dim=4, n_layers=2, layer_size=32).
    # B=256 gives a 2-step batch grid (exercises pipelining / megacore split).
    B, OB_DIM, N_LAYERS, LAYER_SIZE = 256, 4, 2, 32

    root = jax.random.PRNGKey(0)
    k_obs, k_params = jax.random.split(root)

    obs = jax.random.normal(k_obs, (B, OB_DIM), dtype=jnp.float32)
    params = init_value_critic_params(k_params, OB_DIM, N_LAYERS, LAYER_SIZE)

    values = jax.block_until_ready(value_critic_forward(obs, params))
    ref = jax.block_until_ready(_reference_forward(obs, params))

    assert values.shape == (B,), values.shape
    # Hidden-layer matmuls use bf16 MXU operands (f32 accumulate), so compare
    # against the pure-f32 reference with a loosened tolerance.
    assert jnp.allclose(values, ref, atol=2e-2, rtol=2e-2), (values, ref)

    print("KERNEL_OK")
</pallas_src>

<mosaic_0001>
module attributes {stable_mosaic.version = 11 : i64} {
  func.func @_mlp_kernel(%arg0: i32, %arg1: memref<128x4xf32, #tpu.memory_space<vmem>>, %arg2: memref<32x4xf32, #tpu.memory_space<vmem>>, %arg3: memref<32x1xf32, #tpu.memory_space<vmem>>, %arg4: memref<32x32xf32, #tpu.memory_space<vmem>>, %arg5: memref<32x1xf32, #tpu.memory_space<vmem>>, %arg6: memref<32x1xf32, #tpu.memory_space<vmem>>, %arg7: memref<1x1xf32, #tpu.memory_space<vmem>>, %arg8: memref<1x128xf32, #tpu.memory_space<vmem>>) attributes {dimension_semantics = [#tpu.dimension_semantics<parallel>], iteration_bounds = array<i64: 2>, scalar_prefetch = 0 : i64, scratch_operands = 0 : i64, tpu.core_type = #tpu.core_type<tc>, window_params = [{transform_indices = @transform_0, window_bounds = array<i64: 128, 4>}, {pipeline_mode = #tpu.pipeline_mode<synchronous>, transform_indices = @transform_1, window_bounds = array<i64: 32, 4>}, {pipeline_mode = #tpu.pipeline_mode<synchronous>, transform_indices = @transform_2, window_bounds = array<i64: 32, 1>}, {pipeline_mode = #tpu.pipeline_mode<synchronous>, transform_indices = @transform_3, window_bounds = array<i64: 32, 32>}, {pipeline_mode = #tpu.pipeline_mode<synchronous>, transform_indices = @transform_4, window_bounds = array<i64: 32, 1>}, {pipeline_mode = #tpu.pipeline_mode<synchronous>, transform_indices = @transform_5, window_bounds = array<i64: 32, 1>}, {pipeline_mode = #tpu.pipeline_mode<synchronous>, transform_indices = @transform_6, window_bounds = array<i64: 1, 1>}, {transform_indices = @transform_7, window_bounds = array<i64: 1, 128>}]} {
    %c0 = arith.constant 0 : index
    %c0_0 = arith.constant 0 : index
    %0 = vector.load %arg1[%c0, %c0_0] : memref<128x4xf32, #tpu.memory_space<vmem>>, vector<128x4xf32>
    %1 = tpu.transpose %0, [1, 0] : vector<128x4xf32> -> vector<4x128xf32>
    %c0_1 = arith.constant 0 : index
    %c0_2 = arith.constant 0 : index
    %2 = vector.load %arg2[%c0_1, %c0_2] : memref<32x4xf32, #tpu.memory_space<vmem>>, vector<32x4xf32>
    %c0_3 = arith.constant 0 : index
    %c0_4 = arith.constant 0 : index
    %3 = vector.load %arg3[%c0_3, %c0_4] : memref<32x1xf32, #tpu.memory_space<vmem>>, vector<32x1xf32>
    %4 = vector.extract_strided_slice %2 {offsets = [0, 0], sizes = [32, 1], strides = [1, 1]} : vector<32x4xf32> to vector<32x1xf32>
    %5 = vector.extract_strided_slice %1 {offsets = [0, 0], sizes = [1, 128], strides = [1, 1]} : vector<4x128xf32> to vector<1x128xf32>
    %6 = vector.broadcast %4 : vector<32x1xf32> to vector<32x128xf32>
    %7 = vector.broadcast %5 : vector<1x128xf32> to vector<32x128xf32>
    %8 = arith.mulf %6, %7 : vector<32x128xf32>
    %9 = vector.broadcast %3 : vector<32x1xf32> to vector<32x128xf32>
    %10 = arith.addf %9, %8 : vector<32x128xf32>
    %11 = vector.extract_strided_slice %2 {offsets = [0, 1], sizes = [32, 1], strides = [1, 1]} : vector<32x4xf32> to vector<32x1xf32>
    %12 = vector.extract_strided_slice %1 {offsets = [1, 0], sizes = [1, 128], strides = [1, 1]} : vector<4x128xf32> to vector<1x128xf32>
    %13 = vector.broadcast %11 : vector<32x1xf32> to vector<32x128xf32>
    %14 = vector.broadcast %12 : vector<1x128xf32> to vector<32x128xf32>
    %15 = arith.mulf %13, %14 : vector<32x128xf32>
    %16 = arith.addf %10, %15 : vector<32x128xf32>
    %17 = vector.extract_strided_slice %2 {offsets = [0, 2], sizes = [32, 1], strides = [1, 1]} : vector<32x4xf32> to vector<32x1xf32>
    %18 = vector.extract_strided_slice %1 {offsets = [2, 0], sizes = [1, 128], strides = [1, 1]} : vector<4x128xf32> to vector<1x128xf32>
    %19 = vector.broadcast %17 : vector<32x1xf32> to vector<32x128xf32>
    %20 = vector.broadcast %18 : vector<1x128xf32> to vector<32x128xf32>
    %21 = arith.mulf %19, %20 : vector<32x128xf32>
    %22 = arith.addf %16, %21 : vector<32x128xf32>
    %23 = vector.extract_strided_slice %2 {offsets = [0, 3], sizes = [32, 1], strides = [1, 1]} : vector<32x4xf32> to vector<32x1xf32>
    %24 = vector.extract_strided_slice %1 {offsets = [3, 0], sizes = [1, 128], strides = [1, 1]} : vector<4x128xf32> to vector<1x128xf32>
    %25 = vector.broadcast %23 : vector<32x1xf32> to vector<32x128xf32>
    %26 = vector.broadcast %24 : vector<1x128xf32> to vector<32x128xf32>
    %27 = arith.mulf %25, %26 : vector<32x128xf32>
    %28 = arith.addf %22, %27 : vector<32x128xf32>
    %29 = math.tanh %28 : vector<32x128xf32>
    %c0_5 = arith.constant 0 : index
    %c0_6 = arith.constant 0 : index
    %30 = vector.load %arg4[%c0_5, %c0_6] : memref<32x32xf32, #tpu.memory_space<vmem>>, vector<32x32xf32>
    %c0_7 = arith.constant 0 : index
    %c0_8 = arith.constant 0 : index
    %31 = vector.load %arg5[%c0_7, %c0_8] : memref<32x1xf32, #tpu.memory_space<vmem>>, vector<32x1xf32>
    %32 = arith.truncf %30 : vector<32x32xf32> to vector<32x32xbf16>
    %33 = arith.truncf %29 : vector<32x128xf32> to vector<32x128xbf16>
    %cst = arith.constant dense<0.000000e+00> : vector<32x128xf32>
    %34 = tpu.matmul %32, %33, %cst {dimension_numbers = #tpu.dot_dimension_numbers<[1], [0], [0], [1], [0, 0, 1, 1], [], []>} : vector<32x32xbf16>, vector<32x128xbf16>, vector<32x128xf32> -> vector<32x128xf32>
    %35 = vector.broadcast %31 : vector<32x1xf32> to vector<32x128xf32>
    %36 = arith.addf %34, %35 : vector<32x128xf32>
    %37 = math.tanh %36 : vector<32x128xf32>
    %c0_9 = arith.constant 0 : index
    %c0_10 = arith.constant 0 : index
    %38 = vector.load %arg6[%c0_9, %c0_10] : memref<32x1xf32, #tpu.memory_space<vmem>>, vector<32x1xf32>
    %c0_11 = arith.constant 0 : index
    %c0_12 = arith.constant 0 : index
    %39 = vector.load %arg7[%c0_11, %c0_12] : memref<1x1xf32, #tpu.memory_space<vmem>>, vector<1x1xf32>
    %40 = vector.broadcast %38 : vector<32x1xf32> to vector<32x128xf32>
    %41 = arith.mulf %40, %37 : vector<32x128xf32>
    %cst_13 = arith.constant dense<0.000000e+00> : vector<128xf32>
    %42 = vector.multi_reduction <add>, %41, %cst_13 [0] : vector<32x128xf32> to vector<128xf32>
    %43 = vector.shape_cast %42 : vector<128xf32> to vector<1x128xf32>
    %44 = vector.broadcast %39 : vector<1x1xf32> to vector<1x128xf32>
    %45 = arith.addf %43, %44 : vector<1x128xf32>
    %c0_14 = arith.constant 0 : index
    %c0_15 = arith.constant 0 : index
    %46 = vector.load %arg8[%c0_14, %c0_15] : memref<1x128xf32, #tpu.memory_space<vmem>>, vector<1x128xf32>
    tpu.vector_store %arg8[%c0_14, %c0_15], %45 {strides = array<i32>} : memref<1x128xf32, #tpu.memory_space<vmem>>, vector<1x128xf32>,
    return
  }
  func.func @transform_0(%arg0: i32) -> (i32, i32) {
    %c0_i32 = arith.constant 0 : i32
    %c0_i32_0 = arith.constant 0 : i32
    return %arg0, %c0_i32 : i32, i32
  }
  func.func @transform_1(%arg0: i32) -> (i32, i32) {
    %c0_i32 = arith.constant 0 : i32
    %c0_i32_0 = arith.constant 0 : i32
    %c0_i32_1 = arith.constant 0 : i32
    return %c0_i32, %c0_i32_0 : i32, i32
  }
  func.func @transform_2(%arg0: i32) -> (i32, i32) {
    %c0_i32 = arith.constant 0 : i32
    %c0_i32_0 = arith.constant 0 : i32
    %c0_i32_1 = arith.constant 0 : i32
    return %c0_i32, %c0_i32_0 : i32, i32
  }
  func.func @transform_3(%arg0: i32) -> (i32, i32) {
    %c0_i32 = arith.constant 0 : i32
    %c0_i32_0 = arith.constant 0 : i32
    %c0_i32_1 = arith.constant 0 : i32
    return %c0_i32, %c0_i32_0 : i32, i32
  }
  func.func @transform_4(%arg0: i32) -> (i32, i32) {
    %c0_i32 = arith.constant 0 : i32
    %c0_i32_0 = arith.constant 0 : i32
    %c0_i32_1 = arith.constant 0 : i32
    return %c0_i32, %c0_i32_0 : i32, i32
  }
  func.func @transform_5(%arg0: i32) -> (i32, i32) {
    %c0_i32 = arith.constant 0 : i32
    %c0_i32_0 = arith.constant 0 : i32
    %c0_i32_1 = arith.constant 0 : i32
    return %c0_i32, %c0_i32_0 : i32, i32
  }
  func.func @transform_6(%arg0: i32) -> (i32, i32) {
    %c0_i32 = arith.constant 0 : i32
    %c0_i32_0 = arith.constant 0 : i32
    %c0_i32_1 = arith.constant 0 : i32
    return %c0_i32, %c0_i32_0 : i32, i32
  }
  func.func @transform_7(%arg0: i32) -> (i32, i32) {
    %c0_i32 = arith.constant 0 : i32
    %c0_i32_0 = arith.constant 0 : i32
    return %c0_i32, %arg0 : i32, i32
  }
}

</mosaic_0001>

<bundles_post_ra>
// kernel: tpu_custom_call.1
= control target key start
LH: loop header
LB: loop body
LE: loop exit
PB: predicated region body
PF: predicated region fallthrough
CT: control target
= control target key end

     0   :  { %s1078_s0 = inlined_call_operand.vmem [shape: f32[256,4], index: 0, kind: input, shape index: {}]   ;;  %s1079_s1 = inlined_call_operand.vmem [shape: f32[32,4], index: 1, kind: input, shape index: {}]   ;;  %s1080_s2 = inlined_call_operand.vmem [shape: f32[32,1], index: 2, kind: input, shape index: {}]   ;;  %s1081_s3 = inlined_call_operand.vmem [shape: f32[32,32], index: 3, kind: input, shape index: {}]   ;;  %s1082_s4 = inlined_call_operand.vmem [shape: f32[32,1], index: 4, kind: input, shape index: {}]   ;;  %s1083_s5 = inlined_call_operand.vmem [shape: f32[32,1], index: 5, kind: input, shape index: {}]   ;;  %s1084_s6 = inlined_call_operand.<no memory space> [shape: f32[1,1], index: 6, kind: input, shape index: {}]   ;;  %s1085_s7 = inlined_call_operand.hbm [shape: f32[1,256], index: 7, kind: output, shape index: {}]  }
   0x1   :  { %v12_v0 = vstv %s1084_s6 }
   0x2   :  { %13 = vst [vmem:[#allocation2] sm:$0x1] %v12_v0 }
   0x3   :  { %14 = vsyncpa [#allocation4], 0 }
   0x4   :  { %16 = vsyncpa [#allocation4 + $0x1], 0  ;;  %s892_s26 = smov 0   ;;  %s894_s27 = smov 0  }
   0x5   :  { %s896_s28 = smov 0   ;;  %s898_s29 = smov 0  }
   0x6 LB: > { %s685_s6 = sadd.s32 4294967295, %s842_s29   ;;  %s686_s30 = sadd.s32 4294967294, %s842_s29   ;;  %s842_s29 = sphi %s898_s29, %s1091_s29   ;;  %s838_s28 = sphi %s896_s28, %s1090_s28   ;;  %s834_s27 = sphi %s894_s27, %s1089_s27   ;;  %s830_s26 = sphi %s892_s26, %s1088_s26  }
   0x7   : > { %s915_s8 = sadd.s32 1, %s842_s29   ;;  %s181_s9 = sadd.s32 1, %s838_s28 }
   0x8   : > { %s178_s10 = ssub.s32 %s842_s29, %s915_s8  ;;  %p191_p0 = scmp.ne.s32.totalorder %s838_s28, %s834_s27 }
   0x9   : > { %p179_p1 = scmp.eq.s32.totalorder %s178_s10, 0  ;;  %p192_p2 = scmp.eq.s32.totalorder %s685_s6, 1 }
   0xa   : > { %p197_p3 = scmp.ne.s32.totalorder %s834_s27, %s830_s26  ;;  %p198_p4 = scmp.eq.s32.totalorder %s686_s30, 1 }
   0xb   : > { %s927_s11 = scalar_select %p179_p1, %s838_s28, %s181_s9  }
   0xc   : > { %p929_p5 = por %p192_p2, %p191_p0  ;;  %p933_p6 = por %p198_p4, %p197_p3 }
   0xd   : > { %p689_p7 = scmp.ge.s32.totalorder %s842_s29, 1  ;;  %p243_p8 = scmp.lt.s32.totalorder %s842_s29, 3 }
   0xf   : > { %p244_p9 = pnand %p689_p7, %p243_p8 }
  0x10   : > { %s969_s15 = sshll.u32 (!%p244_p9), %s685_s6, 4  ;;  %s272_s14 = sand.u32 (!%p244_p9), 1, %s834_s27  }
  0x11   : > { %247 = sbr.rel (%p244_p9) target bundleno = 497 (0x1f1), region = 48  ;;  %p275_p10 = scmp.lt.s32.totalorder (!%p244_p9), %s969_s15, 31 }
  0x12   : > { %s629_s6 = scalar_lea.hbm (!%p244_p9), %s1085_s7, %s969_s15  ;;  %s619_s21 = scalar_lea.sflag (!%p244_p9), [#allocation4], %s272_s14 }
  0x13   : > { %s848_s23 = smov (!%p244_p9), [#allocation3]  }
  0x14   : > { %s786_s24 = sshll.u32 (!%p244_p9), %s848_s23, 4  ;;  %s787_s24 = int_to_ptr.vmem [resolvable:$false] %s786_s24 }
  0x15   : > { %s788_s25 = scalar_lea.vmem (!%p244_p9), %s787_s24, 32 }
  0x16   : > { %v331_v1 = vld [vmem:[%s1079_s1 + $0x10] sm:$0xff]  ;;  %v844_v2 = vmov 0   ;;  %v332_v4 = vld [vmem:[%s1079_s1 + $0x18] sm:$0xff]  ;;  %v330_v6 = vld [vmem:[%s1079_s1 + $0x8] sm:$0xff]  ;;  %v845_v7 = vmov 1   ;;  %v846_v10 = vmov 2   ;;  %v357_v55 = vlaneseq }
  0x17   : > { %752 = vset.pattern.permute.xlu0 %v844_v2  ;;  %753 = vset.pattern.permute.xlu1 %v844_v2  ;;  %v335_v3 = vld [vmem:[%s1080_s2 + $0x10] sm:$0xff]  ;;  %v336_v5 = vld [vmem:[%s1080_s2 + $0x18] sm:$0xff]  ;;  %v333_v8 = vld [vmem:[%s1080_s2] sm:$0xff]  ;;  %v847_v11 = vmov 3   ;;  %s276_s16 = scalar_select %p275_p10, %s969_s15, 31  ;;  %vm509_vm0 = vcmask 261120  }
  0x18   : > { %349 = vperm.xlu0 %752, %v331_v1   ;;  %377 = vperm.xlu1 %753, %v335_v3   ;;  %v329_v9 = vld [vmem:[%s1079_s1] sm:$0xff]  ;;  %v334_v12 = vld [vmem:[%s1080_s2 + $0x8] sm:$0xff]  ;;  %v483_v30 = vld [vmem:[%s1082_s4 + $0x10] sm:$0xff]  ;;  %v1027_v58 = vshrl.u32 %v357_v55, 7 }
  0x19   : > { %s691_s17 = sshll.u32 %s276_s16, 3  ;;  %v477_v22 = vld [vmem:[%s1081_s3] sm:$0xff]  ;;  %v478_v23 = vld [vmem:[%s1081_s3 + $0x8] sm:$0xff]  ;;  %v484_v32 = vld [vmem:[%s1082_s4 + $0x18] sm:$0xff]  ;;  %s273_s16 = scalar_lea.vmem [#allocation3], %s272_s14 }
  0x1a   : > { %s976_s20 = scalar_lea.vmem %s1078_s0, %s691_s17  ;;  %v485_v25 = vpack.c.bf16 %v478_v23, %v477_v22  ;;  %v481_v26 = vld [vmem:[%s1082_s4] sm:$0xff]  ;;  %v482_v28 = vld [vmem:[%s1082_s4 + $0x8] sm:$0xff]  ;;  %v571_v38 = vld [vmem:[%s1083_s5 + $0x10] sm:$0xff]  ;;  %v359_v61 = vsub.s32 0, %v1027_v58  ;;  %v407_v62 = vsub.s32 1, %v1027_v58  ;;  %v435_v63 = vsub.s32 2, %v1027_v58 }
  0x1b   : > { %v281_v13 = vld [vmem:[%s976_s20] sm:$0xff]  ;;  %v282_v14 = vld [vmem:[%s976_s20 + $0x8] sm:$0xff]  ;;  %v283_v15 = vld [vmem:[%s976_s20 + $0x10] sm:$0xff]  ;;  %v463_v0 = vsub.s32 3, %v1027_v58  ;;  %s631_s17 = sshll.u32 %s273_s16, 4  ;;  %s632_s17 = int_to_ptr.vmem [resolvable:$true] %s631_s17 }
  0x1c   : > { %354 = vperm.xlu0 %752, %v332_v4   ;;  %382 = vperm.xlu1 %753, %v336_v5   ;;  %v284_v16 = vld [vmem:[%s976_s20 + $0x18] sm:$0xff]  ;;  %v285_v17 = vld [vmem:[%s976_s20 + $0x20] sm:$0xff]  ;;  %v286_v18 = vld [vmem:[%s976_s20 + $0x28] sm:$0xff]  ;;  %s782_s22 = scalar_lea.vmem %s632_s17, 16  ;;  %p789_p0 = scmp.lt.s32.totalorder %s632_s17, %s787_s24 }
  0x1d   : > { %v287_v19 = vld [vmem:[%s976_s20 + $0x30] sm:$0xff]  ;;  %v288_v20 = vld [vmem:[%s976_s20 + $0x38] sm:$0xff]  ;;  %v289_v21 = vld [vmem:[%s976_s20 + $0x40] sm:$0xff]  ;;  %705 = vmatprep.mubr.msk.bf16.mxu0 %vm509_vm0, %v485_v25  ;;  %p783_p11 = scmp.ne.s32.totalorder %s632_s17, %s782_s22  ;;  %p790_p1 = scmp.lt.s32.totalorder %s788_s25, %s782_s22 }
  0x1e   : > { %v290_v24 = vld [vmem:[%s976_s20 + $0x48] sm:$0xff]  ;;  %v291_v27 = vld [vmem:[%s976_s20 + $0x50] sm:$0xff]  ;;  %v292_v29 = vld [vmem:[%s976_s20 + $0x58] sm:$0xff] }
  0x1f   : > { %v293_v31 = vld [vmem:[%s976_s20 + $0x60] sm:$0xff]  ;;  %v294_v33 = vld [vmem:[%s976_s20 + $0x68] sm:$0xff]  ;;  %v295_v35 = vld [vmem:[%s976_s20 + $0x70] sm:$0xff]  ;;  %p784_p12 = pnand %p783_p11, %p929_p5  ;;  %p791_p2 = por %p790_p1, %p789_p0 }
  0x20   : > { %344 = vperm.xlu0 %752, %v330_v6   ;;  %754 = vset.pattern.permute.xlu1 %v845_v7  ;;  %v569_v34 = vld [vmem:[%s1083_s5] sm:$0xff]  ;;  %v570_v36 = vld [vmem:[%s1083_s5 + $0x8] sm:$0xff]  ;;  %v296_v37 = vld [vmem:[%s976_s20 + $0x78] sm:$0xff] }
  0x21   : > { %402 = vperm.xlu1 %754, %v332_v4   ;;  %v572_v39 = vld [vmem:[%s1083_s5 + $0x18] sm:$0xff]  ;;  %v573_v40 = vld [vmem:[#allocation2] sm:$0x1]  ;;  %p785_p13 = pneg %p784_p12 }
  0x23   : > { %p792_p3 = pnand %p791_p2, %p785_p13 }
  0x24   : > { %367 = vperm.xlu0 %752, %v333_v8  }
  0x25   : > { %755 = vset.pattern.permute.xlu1 %v844_v2 }
  0x26   : > { %339 = vperm.xlu1 %755, %v329_v9  }
  0x28   : > { %757 = vset.pattern.permute.xlu0 %v845_v7 }
  0x29   : > { %398 = vperm.xlu0 %757, %v331_v1  }
  0x2a   : > { %756 = vset.pattern.permute.xlu1 %v846_v10 }
  0x2b   : > { %426 = vperm.xlu1 %756, %v331_v1  }
  0x2d   : > { %390 = vperm.xlu0 %757, %v329_v9  }
  0x2f   : > { %430 = vperm.xlu1 %756, %v332_v4  }
  0x31   : > { %761 = vset.pattern.permute.xlu0 %v847_v11 }
  0x32   : > { %458 = vperm.xlu0 %761, %v332_v4  }
  0x33   : > { %758 = vset.pattern.permute.xlu1 %v844_v2 }
  0x34   : > { %372 = vperm.xlu1 %758, %v334_v12  }
  0x36   : > { %446 = vperm.xlu0 %761, %v329_v9  }
  0x38   : > { %759 = vset.pattern.permute.xlu1 %v845_v7 }
  0x39   : > { %394 = vperm.xlu1 %759, %v330_v6  }
  0x3d   : > { %760 = vset.pattern.permute.xlu1 %v847_v11 }
  0x3e   : > { %454 = vperm.xlu1 %760, %v331_v1  }
  0x42   : > { %762 = vset.pattern.permute.xlu1 %v846_v10 }
  0x43   : > { %418 = vperm.xlu1 %762, %v329_v9  }
  0x47   : > { %422 = vperm.xlu1 %762, %v330_v6  }
  0x4b   : > { %763 = vset.pattern.permute.xlu1 %v847_v11 }
  0x4c   : > { %450 = vperm.xlu1 %763, %v330_v6  }
  0x50   : > { %764 = vset.pattern.permute.xlu1 %v844_v2 }
  0x51   : > { %491 = vperm.xlu1 %764, %v481_v26  }
  0x54   : > { %297 = vxpose.xlu0.b32.start [1/16] (narrow) %v281_v13, 8 }
  0x55   : > { %496 = vperm.xlu1 %764, %v482_v28  }
  0x58   : > { %298 = vxpose.xlu0.b32.cont [2/16] (narrow) %v282_v14, 8 }
  0x59   : > { %501 = vperm.xlu1 %764, %v483_v30  }
  0x5c   : > { %299 = vxpose.xlu0.b32.cont [3/16] (narrow) %v283_v15, 8 }
  0x5d   : > { %506 = vperm.xlu1 %764, %v484_v32  }
  0x60   : > { %300 = vxpose.xlu0.b32.cont [4/16] (narrow) %v284_v16, 8 }
  0x61   : > { %576 = vperm.xlu1 %764, %v569_v34  }
  0x64   : > { %301 = vxpose.xlu0.b32.cont [5/16] (narrow) %v285_v17, 8 }
  0x65   : > { %581 = vperm.xlu1 %764, %v570_v36  }
  0x68   : > { %302 = vxpose.xlu0.b32.cont [6/16] (narrow) %v286_v18, 8 }
  0x69   : > { %586 = vperm.xlu1 %764, %v571_v38  }
  0x6c   : > { %303 = vxpose.xlu0.b32.cont [7/16] (narrow) %v287_v19, 8 }
  0x6d   : > { %591 = vperm.xlu1 %764, %v572_v39  }
  0x70   : > { %304 = vxpose.xlu0.b32.cont [8/16] (narrow) %v288_v20, 8 }
  0x71   : > { %609 = vperm.xlu1 %764, %v573_v40  }
  0x74   : > { %305 = vxpose.xlu0.b32.cont [9/16] (narrow) %v289_v21, 8 }
  0x78   : > { %306 = vxpose.xlu0.b32.cont [10/16] (narrow) %v290_v24, 8 }
  0x7c   : > { %307 = vxpose.xlu0.b32.cont [11/16] (narrow) %v291_v27, 8 }
  0x80   : > { %308 = vxpose.xlu0.b32.cont [12/16] (narrow) %v292_v29, 8 }
  0x84   : > { %309 = vxpose.xlu0.b32.cont [13/16] (narrow) %v293_v31, 8 }
  0x88   : > { %310 = vxpose.xlu0.b32.cont [14/16] (narrow) %v294_v33, 8 }
  0x8c   : > { %311 = vxpose.xlu0.b32.cont [15/16] (narrow) %v295_v35, 8 }
  0x90   : > { %312 = vxpose.xlu0.b32.end [16/16] (narrow) %v296_v37, 8 }
  0x93   : > { %v378_v41 = vpop.permute.xlu1 %377  ;;  %v350_v43 = vpop.permute.xlu0 %349 }
  0x97   : > { %v383_v42 = vpop.permute.xlu1 %382  ;;  %v355_v45 = vpop.permute.xlu0 %354 }
  0x9b   : > { %v345_v47 = vpop.permute.xlu0 %344 }
  0x9c   : > { %v403_v44 = vpop.permute.xlu1 %402 }
  0x9f   : > { %v368_v49 = vpop.permute.xlu0 %367 }
  0xa1   : > { %v340_v46 = vpop.permute.xlu1 %339 }
  0xa4   : > { %v399_v51 = vpop.permute.xlu0 %398 }
  0xa6   : > { %v427_v48 = vpop.permute.xlu1 %426 }
  0xa8   : > { %v391_v53 = vpop.permute.xlu0 %390 }
  0xaa   : > { %v431_v50 = vpop.permute.xlu1 %430 }
  0xad   : > { %v459_v56 = vpop.permute.xlu0 %458 }
  0xaf   : > { %v373_v52 = vpop.permute.xlu1 %372 }
  0xb1   : > { %v447_v59 = vpop.permute.xlu0 %446 }
  0xb4   : > { %v395_v54 = vpop.permute.xlu1 %394 }
  0xb9   : > { %765 = vset.pattern.permute.xlu0 %v844_v2  ;;  %v455_v57 = vpop.permute.xlu1 %454 }
  0xbe   : > { %v419_v60 = vpop.permute.xlu1 %418 }
  0xc2   : > { %v423_v5 = vpop.permute.xlu1 %422 }
  0xc7   : > { %v451_v31 = vpop.permute.xlu1 %450 }
  0xd0   : > { %v313_v1 = vpop.trf.xlu0 }
  0xd1   : > { %v360_v2 = vrot.slane %v313_v1, %v359_v61  ;;  %v408_v3 = vrot.slane %v313_v1, %v407_v62  ;;  %v436_v4 = vrot.slane %v313_v1, %v435_v63  ;;  %v464_v11 = vrot.slane %v313_v1, %v463_v0 }
  0xd3   : > { %v361_v6 = vmul.f32 %v360_v2, %v340_v46  ;;  %v363_v7 = vmul.f32 %v360_v2, %v350_v43  ;;  %v364_v8 = vmul.f32 %v360_v2, %v355_v45  ;;  %v409_v9 = vmul.f32 %v408_v3, %v391_v53  ;;  %v479_v46 = vld [vmem:[%s1081_s3 + $0x10] sm:$0xff] }
  0xd4   : > { %v411_v10 = vmul.f32 %v408_v3, %v399_v51  ;;  %v412_v15 = vmul.f32 %v408_v3, %v403_v44  ;;  %v437_v16 = vmul.f32 %v436_v4, %v419_v60  ;;  %v439_v17 = vmul.f32 %v436_v4, %v427_v48 }
  0xd5   : > { %v385_v12 = vadd.f32 %v368_v49, %v361_v6  ;;  %v387_v13 = vadd.f32 %v378_v41, %v363_v7  ;;  %v388_v14 = vadd.f32 %v383_v42, %v364_v8  ;;  %v362_v18 = vmul.f32 %v360_v2, %v345_v47  ;;  %v480_v47 = vld [vmem:[%s1081_s3 + $0x18] sm:$0xff]  ;;  %v492_v49 = vpop.permute.xlu1 %491 }
  0xd6   : > { %v440_v22 = vmul.f32 %v436_v4, %v431_v50  ;;  %v465_v23 = vmul.f32 %v464_v11, %v447_v59  ;;  %v467_v24 = vmul.f32 %v464_v11, %v455_v57  ;;  %v410_v26 = vmul.f32 %v408_v3, %v395_v54 }
  0xd7   : > { %v413_v19 = vadd.f32 %v409_v9, %v385_v12  ;;  %v415_v20 = vadd.f32 %v411_v10, %v387_v13  ;;  %v416_v21 = vadd.f32 %v412_v15, %v388_v14  ;;  %v386_v25 = vadd.f32 %v373_v52, %v362_v18 }
  0xd8   : > { %v468_v30 = vmul.f32 %v464_v11, %v459_v56  ;;  %v438_v33 = vmul.f32 %v436_v4, %v423_v5  ;;  %v466_v38 = vmul.f32 %v464_v11, %v451_v31  ;;  %v486_v48 = vpack.c.bf16 %v480_v47, %v479_v46 }
  0xd9   : > { %v441_v27 = vadd.f32 %v437_v16, %v413_v19  ;;  %v443_v28 = vadd.f32 %v439_v17, %v415_v20  ;;  %v444_v29 = vadd.f32 %v440_v22, %v416_v21  ;;  %v414_v32 = vadd.f32 %v410_v26, %v386_v25  ;;  %v497_v50 = vpop.permute.xlu1 %496 }
  0xdb   : > { %v469_v34 = vadd.f32 %v465_v23, %v441_v27  ;;  %v471_v35 = vadd.f32 %v467_v24, %v443_v28  ;;  %v472_v36 = vadd.f32 %v468_v30, %v444_v29  ;;  %v442_v37 = vadd.f32 %v438_v33, %v414_v32 }
  0xdd   : > { %766 = vtanh.f32 %v469_v34  ;;  %v470_v39 = vadd.f32 %v466_v38, %v442_v37  ;;  %v502_v51 = vpop.permute.xlu1 %501 }
  0xde   : > { %768 = vtanh.f32 %v471_v35 }
  0xdf   : > { %770 = vtanh.f32 %v472_v36 }
  0xe0   : > { %772 = vtanh.f32 %v470_v39 }
  0xe1   : > { %v507_v53 = vpop.permute.xlu1 %506 }
  0xe5   : > { %v577_v63 = vpop.permute.xlu1 %576 }
  0xe9   : > { %v582_v0 = vpop.permute.xlu1 %581 }
  0xea   : > { %v767_v40 = vpop.eup %766 }
  0xeb   : > { %v769_v41 = vpop.eup %768 }
  0xec   : > { %v771_v42 = vpop.eup %770 }
  0xed   : > { %v773_v43 = vpop.eup %772  ;;  %v488_v44 = vpack.c.bf16 %v771_v42, %v769_v41  ;;  %v587_v2 = vpop.permute.xlu1 %586 }
  0xee   : > { %v487_v45 = vpack.c.bf16 %v773_v43, %v767_v40 }
  0xef   : > { %701 = vmatprep.subr.bf16.mxu0 %v488_v44 }
  0xf0   : > { %702 = vmatpush3.bf16.msra.mxu0 %v488_v44 }
  0xf1   : > { %703 = vmatprep.subr.bf16.mxu0 %v487_v45  ;;  %v592_v10 = vpop.permute.xlu1 %591 }
  0xf4   : > { %704 = vmatpush3.bf16.msra.mxu0 %v487_v45 }
  0xf5   : > { %v610_v18 = vpop.permute.xlu1 %609 }
  0xf6   : > { %v615_v20 = vrot.slane %v610_v18, %v359_v61 }
  0xf7   : > { %706 = vmatmul.mubr.msk.bf16.vlgmr.msra.gmra.mxu0 %vm509_vm0, %v486_v48 }
 0x1b7   : > { %v707_v52 = vpop.f32.mrf.mxu0 }
 0x1b8   : > { %v559_v56 = vadd.f32 %v707_v52, %v502_v51 }
 0x1b9   : > { %v550_v54 = vpop.f32.mrf.mxu0 }
 0x1ba   : > { %v551_v55 = vadd.f32 %v550_v54, %v492_v49 }
 0x1bb   : > { %v708_v57 = vpop.f32.mrf.mxu0 }
 0x1bc   : > { %774 = vtanh.f32 %v551_v55  ;;  %v562_v60 = vadd.f32 %v708_v57, %v507_v53 }
 0x1bd   : > { %v553_v59 = vpop.f32.mrf.mxu0  ;;  %776 = vtanh.f32 %v559_v56 }
 0x1be   : > { %v554_v62 = vadd.f32 %v553_v59, %v497_v50 }
 0x1c0   : > { %778 = vtanh.f32 %v554_v62 }
 0x1c1   : > { %780 = vtanh.f32 %v562_v60 }
 0x1c9   : > { %v775_v1 = vpop.eup %774 }
 0x1ca   : > { %v777_v3 = vpop.eup %776  ;;  %v594_v5 = vmul.f32 %v775_v1, %v577_v63 }
 0x1cb   : > { %v596_v8 = vmul.f32 %v777_v3, %v587_v2 }
 0x1cd   : > { %v779_v4 = vpop.eup %778 }
 0x1ce   : > { %v595_v6 = vmul.f32 %v779_v4, %v582_v0  ;;  %v781_v7 = vpop.eup %780 }
 0x1cf   : > { %v597_v11 = vmul.f32 %v781_v7, %v592_v10 }
 0x1d0   : > { %v598_v9 = vadd.f32 %v595_v6, %v594_v5 }
 0x1d2   : > { %v599_v12 = vadd.f32 %v598_v9, %v596_v8 }
 0x1d4   : > { %v600_v13 = vadd.f32 %v599_v12, %v597_v11 }
 0x1d6   : > { %v601_v14 = vrot.slane %v600_v13, 4 }
 0x1d8   : > { %v602_v15 = vadd.f32 %v601_v14, %v600_v13 }
 0x1da   : > { %v603_v16 = vrot.slane %v602_v15, 2 }
 0x1dc   : > { %v604_v17 = vadd.f32 %v603_v16, %v602_v15 }
 0x1de   : > { %v605_v19 = vrot.slane %v604_v17, 1 }
 0x1e0   : > { %v606_v21 = vadd.f32 %v605_v19, %v604_v17 }
 0x1e2   : > { %v616_v22 = vadd.f32 %v615_v20, %v606_v21 }
 0x1e4   : > { %617 = vst [vmem:[%s273_s16] sm:$0x1] %v616_v22 }
 0x1e5   : > { %795 = shalt.err (!%p792_p3)
}
 0x1e6   : > { %s796_s20 = scalar_lea.hbm %s629_s6, 16  ;;  %s800_s9 = scalar_lea.hbm %s1085_s7, 32 }
 0x1e7   : > { %p797_p4 = scmp.ne.s32.totalorder %s629_s6, %s796_s20  ;;  %p801_p9 = scmp.lt.s32.totalorder %s629_s6, %s1085_s7 }
 0x1e8   : > { %p802_p10 = scmp.lt.s32.totalorder %s800_s9, %s796_s20 }
 0x1e9   : > { %p798_p7 = pnand %p797_p4, %p929_p5 }
 0x1ea   : > { %p803_p11 = por %p802_p10, %p801_p9 }
 0x1eb   : > { %p799_p8 = pneg %p798_p7 }
 0x1ed   : > { %p804_p12 = pnand %p803_p11, %p799_p8 }
 0x1ef   : > { %807 = shalt.err (!%p804_p12)
}
 0x1f0   : > { %709 = dma.vmem_to_hbm [thread:$0]  (%p929_p5), %s632_s17, 16, %s629_s6, %s619_s21  }
 0x1f1 PF: > { %p715_p13 = scmp.ge.s32.totalorder %s842_s29, 2  ;;  %s643_s16 = sand.u32 1, %s830_s26  }
 0x1f2   : > { %s644_s18 = scalar_lea.sflag [#allocation4], %s643_s16 }
 0x1f3   : > { %p712_p0 = pnand %p715_p13, %p933_p6 }
 0x1f5   : > { %p713_p1 = pneg %p712_p0 }
 0x1f7   : > { %825 = dma.done.wait (%p713_p1), %s644_s18, 16  }
 0x1f8   : > { %827 = vsyncadd (%p713_p1), %s644_s18, 4294967280  ;;  %p19_p2 = scmp.ge.s32.totalorder %s915_s8, 4   ;;  %s1088_s26 = smov %s834_s27 }
 0x1f9   : > { %s1089_s27 = smov %s838_s28  ;;  %s1090_s28 = smov %s927_s11 }
 0x1fa   : > { %s1091_s29 = smov %s915_s8  ;;  %21 = sbr.rel (!%p19_p2) target bundleno = 6 (0x6), region = 83 }
 0x1ff   :  { %648 = vsyncpa [#allocation4], 1 }
 0x200   :  { %650 = vsyncpa [#allocation4 + $0x1], 1 }

</bundles_post_ra>
